<compile_context>
chip_gen: v7x
topology: tpu7x:2x2x1
jax: 0.10.0
libtpu: 0.0.40
codegen_flags: <defaults>
</compile_context>

<pallas_src>
import functools

import jax
import jax.numpy as jnp
from jax.experimental import pallas as pl
from jax.experimental.pallas import tpu as pltpu

_MIB = 1024 * 1024


def _round_up(v, m):
    return (v + m - 1) // m * m


def _cdiv(a, b):
    return -(-a // b)


def _chip_defaults():
    """Per-generation tile sizes / VMEM caps."""
    kind = ""
    try:
        kind = jax.devices()[0].device_kind.lower()
    except Exception:
        pass
    if "v5 lite" in kind or "v5e" in kind or "v5lite" in kind:
        # v5e: 197 TF/s / 0.82 TB/s -> knee ~240 rows; raise tiny default
        # scoped VMEM explicitly (128 MiB physical).
        return dict(tm_max=256, th=256, vmem_cap=96 * _MIB, min_m_tiles=1)
    if "v6" in kind or "trillium" in kind:
        # v6e: knee ~650 FLOP/byte -> tm ~1024; 128 MiB VMEM.
        return dict(tm_max=1024, th=512, vmem_cap=100 * _MIB, min_m_tiles=1)
    if "7" in kind:
        # v7x: 64 MiB VMEM per TC, 2 TCs/chip; knee ~310 FLOP/byte -> tm ~512.
        return dict(tm_max=512, th=256, vmem_cap=56 * _MIB, min_m_tiles=2)
    # Unknown chip: conservative config that fits a 64 MiB VMEM.
    return dict(tm_max=512, th=256, vmem_cap=56 * _MIB, min_m_tiles=1)


_CHIP = _chip_defaults()


def prepare_weights(w1_t, w2_t, w3_t, *, th=None):
    """Pad / fuse / pre-block weights ONCE (init time, not per call).

    Args:
      w1_t, w2_t: (E, H)  -- nn.Linear weights already transposed to (in, out).
      w3_t:       (H, E)
    Returns:
      w12: (Hp//th, Ep, 2*th) fused [W1 | W2] per-H-slab blocks (each slab is
           one contiguous DMA).
      w3p: (Hp, Ep) padded W3^T (leading-dim H slabs are already contiguous).
    """
    E, H = w1_t.shape
    assert w2_t.shape == (E, H) and w3_t.shape == (H, E)
    assert w1_t.dtype == w2_t.dtype == w3_t.dtype
    if th is None:
        th = _CHIP["th"]
    th = min(th, _round_up(H, 128))
    Ep = _round_up(E, 128)
    Hp = _round_up(H, th)
    n_h = Hp // th

    # Zero padding is semantically neutral: silu(0)*0 == 0 and padded
    # rows/columns contribute 0 to every matmul.
    w1p = jnp.pad(w1_t, ((0, Ep - E), (0, Hp - H)))
    w2p = jnp.pad(w2_t, ((0, Ep - E), (0, Hp - H)))
    w3p = jnp.pad(w3_t, ((0, Hp - H), (0, Ep - E)))

    w1b = w1p.reshape(Ep, n_h, th).transpose(1, 0, 2)   # (n_h, Ep, th)
    w2b = w2p.reshape(Ep, n_h, th).transpose(1, 0, 2)   # (n_h, Ep, th)
    w12 = jnp.concatenate([w1b, w2b], axis=-1)          # (n_h, Ep, 2*th)
    return w12, w3p


def _ffn_kernel(x_ref, w12_ref, w3_ref, o_ref, acc_ref):
    j = pl.program_id(1)  # hidden-dim (reduction) axis, innermost

    @pl.when(j == 0)
    def _():
        acc_ref[...] = jnp.zeros_like(acc_ref)

    th = w3_ref.shape[0]
    x = x_ref[...]                                                     # (tm, Ep)
    # Fused fc1/fc2: one MXU matmul against the [W1 | W2] slab, f32 accumulate.
    ab = jnp.dot(x, w12_ref[...], preferred_element_type=jnp.float32)  # (tm, 2*th)
    a = ab[:, :th]            # static, lane-aligned slices (th % 128 == 0)
    b = ab[:, th:]
    h = (a * jax.nn.sigmoid(a)) * b   # SiLU gate in f32 (VPU + EUP sigmoid)
    # Cast back to weight dtype so fc3 also runs native on the MXU, and
    # accumulate the partial product into the resident f32 scratch.
    acc_ref[...] += jnp.dot(h.astype(w3_ref.dtype), w3_ref[...],
                            preferred_element_type=jnp.float32)

    @pl.when(j == pl.num_programs(1) - 1)
    def _():
        o_ref[...] = acc_ref[...].astype(o_ref.dtype)


@jax.jit
def feed_forward(x, w12, w3p):
    """x: (B, S, E); (w12, w3p) from prepare_weights. Returns (B, S, E)."""
    B, S, E = x.shape
    n_h, Ep, two_th = w12.shape
    th = two_th // 2
    Hp = n_h * th
    assert w3p.shape == (Hp, Ep)

    # Keep MXU inputs in one native dtype (avoid silent promotion on the MXU).
    wdtype = w12.dtype
    out_dtype = jnp.result_type(x.dtype, wdtype)
    if x.dtype != wdtype:
        x = x.astype(wdtype)

    M = B * S
    # Balanced M tiles (avoid a mostly-zero trailing tile); on v7x also force
    # >= 2 tiles so the "parallel" M axis actually shards across both TCs.
    n_m = max(_cdiv(M, _CHIP["tm_max"]),
              _CHIP["min_m_tiles"] if M >= 16 else 1)
    tm = _round_up(_cdiv(M, n_m), 8)
    Mp = tm * n_m

    x2d = x.reshape(M, E)
    xp = jnp.pad(x2d, ((0, Mp - M), (0, Ep - E)))   # cheap per-call pad (x only)

    itemsize = jnp.dtype(wdtype).itemsize
    # Real per-step footprint: double-buffered x tile, fused W12 slab, W3 slab,
    # output tile, plus the resident f32 accumulator.
    step_bytes = (2 * (tm * Ep + Ep * two_th + th * Ep + tm * Ep) * itemsize
                  + tm * Ep * 4)
    vmem_limit = int(min(_CHIP["vmem_cap"],
                         max(32 * _MIB, step_bytes + 16 * _MIB)))

    cost = pl.CostEstimate(
        flops=6 * Mp * Ep * Hp,                    # fc1+fc2 fused + fc3
        transcendentals=Mp * Hp,                   # sigmoid in the SiLU gate
        bytes_accessed=(2 * Mp * Ep) * itemsize    # x in + out
        + n_m * (3 * Ep * Hp) * itemsize,          # weights re-streamed per M tile
    )

    grid = (n_m, n_h)
    outp = pl.pallas_call(
        _ffn_kernel,
        out_shape=jax.ShapeDtypeStruct((Mp, Ep), out_dtype),
        grid_spec=pltpu.PrefetchScalarGridSpec(
            num_scalar_prefetch=0,
            grid=grid,
            in_specs=[
                pl.BlockSpec((tm, Ep), lambda i, j: (i, 0)),              # x tile
                pl.BlockSpec((None, Ep, two_th), lambda i, j: (j, 0, 0)),  # [W1|W2] slab
                pl.BlockSpec((th, Ep), lambda i, j: (j, 0)),              # W3 slab
            ],
            out_specs=pl.BlockSpec((tm, Ep), lambda i, j: (i, 0)),
            scratch_shapes=[pltpu.VMEM((tm, Ep), jnp.float32)],
        ),
        compiler_params=pltpu.CompilerParams(
            # M axis shards across TensorCores; H axis revisits the
            # output/accumulator block so it must stay "arbitrary".
            dimension_semantics=("parallel", "arbitrary"),
            vmem_limit_bytes=vmem_limit,
        ),
        cost_estimate=cost,
    )(xp, w12, w3p)

    return outp[:M, :E].reshape(B, S, E)


def _reference(x, w1_t, w2_t, w3_t):
    a = x @ w1_t
    b = x @ w2_t
    return (jax.nn.silu(a) * b) @ w3_t


if __name__ == "__main__":
    # Toy cfg: emb_dim=32, hidden_dim=64, dtype=float32 (padded to 128 lanes
    # inside prepare_weights / the wrapper).
    B, S, E, H = 2, 8, 32, 64
    dtype = jnp.float32

    key = jax.random.PRNGKey(0)
    kx, k1, k2, k3 = jax.random.split(key, 4)

    x = jax.random.normal(kx, (B, S, E), dtype=dtype)
    # PyTorch nn.Linear weights are (out, in); we pass the transpose (in, out).
    w1_t = jax.random.normal(k1, (E, H), dtype=dtype) * 0.05
    w2_t = jax.random.normal(k2, (E, H), dtype=dtype) * 0.05
    w3_t = jax.random.normal(k3, (H, E), dtype=dtype) * 0.05

    # One-time weight layout (init-time cost, off the per-call path).
    w12, w3p = prepare_weights(w1_t, w2_t, w3_t)

    out = feed_forward(x, w12, w3p)
    out = jax.block_until_ready(out)

    ref = _reference(x, w1_t, w2_t, w3_t)
    assert out.shape == (B, S, E)
    assert jnp.allclose(out, ref, atol=1e-4, rtol=1e-4), "mismatch vs reference"

    print("KERNEL_OK")
</pallas_src>

<mosaic_0001>
module attributes {stable_mosaic.version = 11 : i64} {
  func.func @_ffn_kernel(%arg0: i32, %arg1: i32, %arg2: memref<16x128xf32, #tpu.memory_space<vmem>>, %arg3: memref<1x128x256xf32, #tpu.memory_space<vmem>>, %arg4: memref<128x128xf32, #tpu.memory_space<vmem>>, %arg5: memref<16x128xf32, #tpu.memory_space<vmem>>, %arg6: memref<16x128xf32, #tpu.memory_space<vmem>>) attributes {dimension_semantics = [#tpu.dimension_semantics<parallel>, #tpu.dimension_semantics<arbitrary>], iteration_bounds = array<i64: 1, 1>, scalar_prefetch = 0 : i64, scratch_operands = 1 : i64, tpu.core_type = #tpu.core_type<tc>, window_params = [{transform_indices = @transform_0, window_bounds = array<i64: 16, 128>}, {transform_indices = @transform_1, window_bounds = array<i64: 1, 128, 256>}, {transform_indices = @transform_2, window_bounds = array<i64: 128, 128>}, {transform_indices = @transform_3, window_bounds = array<i64: 16, 128>}]} {
    %c0_i32 = arith.constant 0 : i32
    %0 = arith.cmpi eq, %arg1, %c0_i32 : i32
    %1 = arith.extui %0 : i1 to i32
    %c0_i32_0 = arith.constant 0 : i32
    %2 = arith.cmpi ne, %1, %c0_i32_0 : i32
    scf.if %2 {
      %cst_15 = arith.constant 0.000000e+00 : f32
      %24 = vector.broadcast %cst_15 : f32 to vector<16x128xf32>
      %c0_16 = arith.constant 0 : index
      %c0_17 = arith.constant 0 : index
      %25 = vector.load %arg6[%c0_16, %c0_17] : memref<16x128xf32, #tpu.memory_space<vmem>>, vector<16x128xf32>
      tpu.vector_store %arg6[%c0_16, %c0_17], %24 {strides = array<i32>} : memref<16x128xf32, #tpu.memory_space<vmem>>, vector<16x128xf32>,
    } else {
    }
    %c0 = arith.constant 0 : index
    %c0_1 = arith.constant 0 : index
    %3 = vector.load %arg2[%c0, %c0_1] : memref<16x128xf32, #tpu.memory_space<vmem>>, vector<16x128xf32>
    %c0_2 = arith.constant 0 : index
    %c0_3 = arith.constant 0 : index
    %c0_4 = arith.constant 0 : index
    %4 = vector.load %arg3[%c0_2, %c0_3, %c0_4] : memref<1x128x256xf32, #tpu.memory_space<vmem>>, vector<1x128x256xf32>
    %5 = vector.shape_cast %4 : vector<1x128x256xf32> to vector<128x256xf32>
    %cst = arith.constant dense<0.000000e+00> : vector<16x256xf32>
    %6 = tpu.matmul %3, %5, %cst {dimension_numbers = #tpu.dot_dimension_numbers<[1], [0], [0], [1], [0, 0, 1, 1], [], []>} : vector<16x128xf32>, vector<128x256xf32>, vector<16x256xf32> -> vector<16x256xf32>
    %7 = vector.extract_strided_slice %6 {offsets = [0, 0], sizes = [16, 128], strides = [1, 1]} : vector<16x256xf32> to vector<16x128xf32>
    %8 = vector.extract_strided_slice %6 {offsets = [0, 128], sizes = [16, 128], strides = [1, 1]} : vector<16x256xf32> to vector<16x128xf32>
    %9 = arith.negf %7 : vector<16x128xf32>
    %10 = math.exp %9 : vector<16x128xf32>
    %cst_5 = arith.constant 1.000000e+00 : f32
    %11 = vector.broadcast %cst_5 : f32 to vector<16x128xf32>
    %12 = arith.addf %11, %10 : vector<16x128xf32>
    %13 = arith.divf %11, %12 : vector<16x128xf32>
    %14 = arith.mulf %7, %13 : vector<16x128xf32>
    %15 = arith.mulf %14, %8 : vector<16x128xf32>
    %c0_6 = arith.constant 0 : index
    %c0_7 = arith.constant 0 : index
    %16 = vector.load %arg6[%c0_6, %c0_7] : memref<16x128xf32, #tpu.memory_space<vmem>>, vector<16x128xf32>
    %c0_8 = arith.constant 0 : index
    %c0_9 = arith.constant 0 : index
    %17 = vector.load %arg4[%c0_8, %c0_9] : memref<128x128xf32, #tpu.memory_space<vmem>>, vector<128x128xf32>
    %cst_10 = arith.constant dense<0.000000e+00> : vector<16x128xf32>
    %18 = tpu.matmul %15, %17, %cst_10 {dimension_numbers = #tpu.dot_dimension_numbers<[1], [0], [0], [1], [0, 0, 1, 1], [], []>} : vector<16x128xf32>, vector<128x128xf32>, vector<16x128xf32> -> vector<16x128xf32>
    %19 = arith.addf %16, %18 : vector<16x128xf32>
    %c0_11 = arith.constant 0 : index
    %c0_12 = arith.constant 0 : index
    %20 = vector.load %arg6[%c0_11, %c0_12] : memref<16x128xf32, #tpu.memory_space<vmem>>, vector<16x128xf32>
    tpu.vector_store %arg6[%c0_11, %c0_12], %19 {strides = array<i32>} : memref<16x128xf32, #tpu.memory_space<vmem>>, vector<16x128xf32>,
    %c0_i32_13 = arith.constant 0 : i32
    %21 = arith.cmpi eq, %arg1, %c0_i32_13 : i32
    %22 = arith.extui %21 : i1 to i32
    %c0_i32_14 = arith.constant 0 : i32
    %23 = arith.cmpi ne, %22, %c0_i32_14 : i32
    scf.if %23 {
      %c0_15 = arith.constant 0 : index
      %c0_16 = arith.constant 0 : index
      %24 = vector.load %arg6[%c0_15, %c0_16] : memref<16x128xf32, #tpu.memory_space<vmem>>, vector<16x128xf32>
      %c0_17 = arith.constant 0 : index
      %c0_18 = arith.constant 0 : index
      %25 = vector.load %arg5[%c0_17, %c0_18] : memref<16x128xf32, #tpu.memory_space<vmem>>, vector<16x128xf32>
      tpu.vector_store %arg5[%c0_17, %c0_18], %24 {strides = array<i32>} : memref<16x128xf32, #tpu.memory_space<vmem>>, vector<16x128xf32>,
    } else {
    }
    return
  }
  func.func @transform_0(%arg0: i32, %arg1: i32) -> (i32, i32) {
    %c0_i32 = arith.constant 0 : i32
    %c0_i32_0 = arith.constant 0 : i32
    return %arg0, %c0_i32 : i32, i32
  }
  func.func @transform_1(%arg0: i32, %arg1: i32) -> (i32, i32, i32) {
    %c0_i32 = arith.constant 0 : i32
    %c0_i32_0 = arith.constant 0 : i32
    %c0_i32_1 = arith.constant 0 : i32
    return %arg1, %c0_i32, %c0_i32_0 : i32, i32, i32
  }
  func.func @transform_2(%arg0: i32, %arg1: i32) -> (i32, i32) {
    %c0_i32 = arith.constant 0 : i32
    %c0_i32_0 = arith.constant 0 : i32
    return %arg1, %c0_i32 : i32, i32
  }
  func.func @transform_3(%arg0: i32, %arg1: i32) -> (i32, i32) {
    %c0_i32 = arith.constant 0 : i32
    %c0_i32_0 = arith.constant 0 : i32
    return %arg0, %c0_i32 : i32, i32
  }
}

</mosaic_0001>

<bundles_post_ra>
// kernel: feed_forward.1
= control target key start
LH: loop header
LB: loop body
LE: loop exit
PB: predicated region body
PF: predicated region fallthrough
CT: control target
= control target key end

     0   :  { %8 = vsyncpa [#allocation4], 0  ;;  %s532_s0 = inlined_call_operand.vmem [shape: f32[16,128], index: 0, kind: input, shape index: {}]   ;;  %s533_s1 = inlined_call_operand.hbm [shape: f32[1,128,256], index: 1, kind: input, shape index: {}]   ;;  %s534_s2 = inlined_call_operand.hbm [shape: f32[128,128], index: 2, kind: input, shape index: {}]   ;;  %s535_s3 = inlined_call_operand.vmem [shape: f32[16,128], index: 3, kind: output, shape index: {}]  }
   0x1   :  { %9 = vsyncpa [#allocation6], 0  ;;  %s467_s12 = smov [#allocation3]   ;;  %s419_s16 = scalar_lea.hbm %s533_s1, 4096 }
   0x2   :  { %s17_s13 = sshll.u32 %s467_s12, 4  ;;  %p420_p0 = scmp.ne.s32.totalorder %s533_s1, %s419_s16  ;;  %s18_s13 = int_to_ptr.vmem [resolvable:$true] %s17_s13 }
   0x3   :  { %p423_p1 = scmp.lt.u32.totalorder %s419_s16, %s533_s1 }
   0x5   :  { %p425_p2 = pnand %p423_p1, %p420_p0 }
   0x7   :  { %428 = shalt.err (!%p425_p2)
}
   0x8   :  { %s429_s21 = scalar_lea.vmem %s18_s13, 4096  ;;  %p434_p4 = scmp.lt.s32.totalorder %s18_s13, %s18_s13 }
   0x9   :  { %p430_p3 = scmp.ne.s32.totalorder %s18_s13, %s429_s21  ;;  %p435_p5 = scmp.lt.s32.totalorder %s429_s21, %s429_s21 }
   0xb   :  { %p436_p6 = por %p435_p5, %p434_p4 }
   0xd   :  { %p437_p7 = pnand %p436_p6, %p430_p3 }
   0xf   :  { %440 = shalt.err (!%p437_p7)
}
  0x10   :  { %s468_s22 = smov 256   ;;  %s469_s23 = smov 16  }
  0x11   :  { %23 = dma.hbm_to_vmem [thread:$0]  %s533_s1, 4096, %s18_s13, [#allocation4], %s468_s22, %s468_s22, %s469_s23  }
  0x12   :  { %s470_s26 = smov [#allocation5]   ;;  %s441_s30 = scalar_lea.hbm %s534_s2, 2048 }
  0x13   :  { %s29_s27 = sshll.u32 %s470_s26, 4  ;;  %p442_p8 = scmp.ne.s32.totalorder %s534_s2, %s441_s30  ;;  %s30_s27 = int_to_ptr.vmem [resolvable:$true] %s29_s27 }
  0x14   :  { %p445_p9 = scmp.lt.u32.totalorder %s441_s30, %s534_s2 }
  0x16   :  { %p447_p10 = pnand %p445_p9, %p442_p8 }
  0x18   :  { %450 = shalt.err (!%p447_p10)
}
  0x19   :  { %s451_s8 = scalar_lea.vmem %s30_s27, 2048  ;;  %p456_p12 = scmp.lt.s32.totalorder %s30_s27, %s30_s27 }
  0x1a   :  { %p452_p11 = scmp.ne.s32.totalorder %s30_s27, %s451_s8  ;;  %p457_p13 = scmp.lt.s32.totalorder %s451_s8, %s451_s8 }
  0x1c   :  { %p458_p0 = por %p457_p13, %p456_p12 }
  0x1e   :  { %p459_p1 = pnand %p458_p0, %p452_p11 }
  0x20   :  { %462 = shalt.err (!%p459_p1)
}
  0x21   :  { %s471_s1 = smov 128   ;;  %s472_s9 = smov 8  }
  0x22   :  { %35 = dma.hbm_to_vmem [thread:$0]  %s534_s2, 2048, %s30_s27, [#allocation6], %s471_s1, %s471_s1, %s472_s9  }
  0x23   :  { %463 = dma.done.wait [#allocation4], 4096  }
  0x24   :  { %464 = vsyncadd [#allocation4], 4294963200 }
  0x25   :  { %465 = dma.done.wait [#allocation6], 2048  }
  0x26   :  { %466 = vsyncadd [#allocation6], 4294965248  ;;  %v473_v0 = vmov 0.0   ;;  %v51_v1 = vld [vmem:[#allocation3 + $0x8] sm:$0xff]  ;;  %v53_v2 = vld [vmem:[#allocation3 + $0x18] sm:$0xff] }
  0x27   :  { %146 = vmatprep.mubr.f32.mxu0 %v473_v0  ;;  %v50_v3 = vld [vmem:[#allocation3] sm:$0xff]  ;;  %v340_v4 = vpack.c.bf16 %v53_v2, %v51_v1  ;;  %v52_v5 = vld [vmem:[#allocation3 + $0x10] sm:$0xff]  ;;  %v55_v6 = vld [vmem:[#allocation3 + $0x28] sm:$0xff] }
  0x28   :  { %v57_v7 = vld [vmem:[#allocation3 + $0x38] sm:$0xff]  ;;  %v342_v8 = vpack.c.bf16 %v52_v5, %v50_v3  ;;  %v54_v10 = vld [vmem:[#allocation3 + $0x20] sm:$0xff]  ;;  %v56_v11 = vld [vmem:[#allocation3 + $0x30] sm:$0xff] }
  0x29   :  { %v344_v9 = vpack.c.bf16 %v57_v7, %v55_v6  ;;  %v59_v12 = vld [vmem:[#allocation3 + $0x48] sm:$0xff]  ;;  %341 = vmatprep.subr.bf16.mxu0 %v340_v4  ;;  %v61_v13 = vld [vmem:[#allocation3 + $0x58] sm:$0xff]  ;;  %v346_v14 = vpack.c.bf16 %v56_v11, %v54_v10  ;;  %v58_v16 = vld [vmem:[#allocation3 + $0x40] sm:$0xff] }
  0x2a   :  { %343 = vmatpush1.bf16.msra.mxu0 %v342_v8  ;;  %v348_v15 = vpack.c.bf16 %v61_v13, %v59_v12  ;;  %v60_v17 = vld [vmem:[#allocation3 + $0x50] sm:$0xff]  ;;  %v63_v18 = vld [vmem:[#allocation3 + $0x68] sm:$0xff]  ;;  %v65_v19 = vld [vmem:[#allocation3 + $0x78] sm:$0xff] }
  0x2b   :  { %345 = vmatprep.subr.bf16.mxu0 %v344_v9  ;;  %v350_v20 = vpack.c.bf16 %v60_v17, %v58_v16  ;;  %v352_v21 = vpack.c.bf16 %v65_v19, %v63_v18  ;;  %v62_v22 = vld [vmem:[#allocation3 + $0x60] sm:$0xff]  ;;  %v64_v23 = vld [vmem:[#allocation3 + $0x70] sm:$0xff]  ;;  %v67_v24 = vld [vmem:[#allocation3 + $0x88] sm:$0xff] }
  0x2c   :  { %v69_v25 = vld [vmem:[#allocation3 + $0x98] sm:$0xff]  ;;  %v354_v26 = vpack.c.bf16 %v64_v23, %v62_v22  ;;  %v66_v28 = vld [vmem:[#allocation3 + $0x80] sm:$0xff]  ;;  %v68_v29 = vld [vmem:[#allocation3 + $0x90] sm:$0xff] }
  0x2d   :  { %v356_v27 = vpack.c.bf16 %v69_v25, %v67_v24  ;;  %v71_v30 = vld [vmem:[#allocation3 + $0xa8] sm:$0xff]  ;;  %v73_v31 = vld [vmem:[#allocation3 + $0xb8] sm:$0xff]  ;;  %v358_v32 = vpack.c.bf16 %v68_v29, %v66_v28  ;;  %v70_v34 = vld [vmem:[#allocation3 + $0xa0] sm:$0xff] }
  0x2e   :  { %347 = vmatpush1.bf16.msra.mxu0 %v346_v14  ;;  %v360_v33 = vpack.c.bf16 %v73_v31, %v71_v30  ;;  %v72_v35 = vld [vmem:[#allocation3 + $0xb0] sm:$0xff]  ;;  %v75_v36 = vld [vmem:[#allocation3 + $0xc8] sm:$0xff]  ;;  %v77_v37 = vld [vmem:[#allocation3 + $0xd8] sm:$0xff] }
  0x2f   :  { %349 = vmatprep.subr.bf16.mxu0 %v348_v15  ;;  %v362_v38 = vpack.c.bf16 %v72_v35, %v70_v34  ;;  %v364_v39 = vpack.c.bf16 %v77_v37, %v75_v36  ;;  %v74_v40 = vld [vmem:[#allocation3 + $0xc0] sm:$0xff]  ;;  %v76_v41 = vld [vmem:[#allocation3 + $0xd0] sm:$0xff]  ;;  %v79_v42 = vld [vmem:[#allocation3 + $0xe8] sm:$0xff] }
  0x30   :  { %v81_v43 = vld [vmem:[#allocation3 + $0xf8] sm:$0xff]  ;;  %v366_v44 = vpack.c.bf16 %v76_v41, %v74_v40  ;;  %v78_v46 = vld [vmem:[#allocation3 + $0xe0] sm:$0xff]  ;;  %v80_v47 = vld [vmem:[#allocation3 + $0xf0] sm:$0xff] }
  0x31   :  { %v368_v45 = vpack.c.bf16 %v81_v43, %v79_v42  ;;  %v370_v48 = vpack.c.bf16 %v80_v47, %v78_v46  ;;  %v48_v49 = vld [vmem:[%s532_s0] sm:$0xff]  ;;  %v49_v50 = vld [vmem:[%s532_s0 + $0x8] sm:$0xff]  ;;  %v179_v54 = vld [vmem:[#allocation5 + $0x10] sm:$0xff] }
  0x32   :  { %351 = vmatpush1.bf16.msra.mxu0 %v350_v20  ;;  %v177_v51 = vld [vmem:[#allocation5] sm:$0xff]  ;;  %v178_v52 = vld [vmem:[#allocation5 + $0x8] sm:$0xff]  ;;  %v180_v55 = vld [vmem:[#allocation5 + $0x18] sm:$0xff] }
  0x33   :  { %353 = vmatprep.subr.bf16.mxu0 %v352_v21  ;;  %v372_v53 = vpack.c.bf16 %v178_v52, %v177_v51  ;;  %v376_v56 = vpack.c.bf16 %v180_v55, %v179_v54  ;;  %v181_v57 = vld [vmem:[#allocation5 + $0x20] sm:$0xff]  ;;  %v182_v58 = vld [vmem:[#allocation5 + $0x28] sm:$0xff]  ;;  %v183_v60 = vld [vmem:[#allocation5 + $0x30] sm:$0xff] }
  0x34   :  { %v380_v59 = vpack.c.bf16 %v182_v58, %v181_v57  ;;  %v184_v61 = vld [vmem:[#allocation5 + $0x38] sm:$0xff]  ;;  %v185_v63 = vld [vmem:[#allocation5 + $0x40] sm:$0xff]  ;;  %v187_v2 = vld [vmem:[#allocation5 + $0x50] sm:$0xff] }
  0x35   :  { %373 = vmatprep.subr.bf16.mxu1 %v372_v53  ;;  %v384_v62 = vpack.c.bf16 %v184_v61, %v183_v60  ;;  %v188_v3 = vld [vmem:[#allocation5 + $0x58] sm:$0xff]  ;;  %v189_v5 = vld [vmem:[#allocation5 + $0x60] sm:$0xff]  ;;  %v190_v6 = vld [vmem:[#allocation5 + $0x68] sm:$0xff] }
  0x36   :  { %355 = vmatpush1.bf16.msra.mxu0 %v354_v26  ;;  %375 = vmatpush3.bf16.msra.mxu1 %v372_v53  ;;  %v392_v4 = vpack.c.bf16 %v188_v3, %v187_v2  ;;  %v396_v7 = vpack.c.bf16 %v190_v6, %v189_v5  ;;  %v191_v8 = vld [vmem:[#allocation5 + $0x70] sm:$0xff]  ;;  %v192_v9 = vld [vmem:[#allocation5 + $0x78] sm:$0xff] }
  0x37   :  { %357 = vmatprep.subr.bf16.mxu0 %v356_v27  ;;  %377 = vmatprep.subr.bf16.mxu1 %v376_v56  ;;  %v400_v10 = vpack.c.bf16 %v192_v9, %v191_v8 }
  0x3a   :  { %359 = vmatpush1.bf16.msra.mxu0 %v358_v32  ;;  %379 = vmatpush3.bf16.msra.mxu1 %v376_v56 }
  0x3b   :  { %361 = vmatprep.subr.bf16.mxu0 %v360_v33  ;;  %381 = vmatprep.subr.bf16.mxu1 %v380_v59 }
  0x3e   :  { %363 = vmatpush1.bf16.msra.mxu0 %v362_v38  ;;  %383 = vmatpush3.bf16.msra.mxu1 %v380_v59 }
  0x3f   :  { %365 = vmatprep.subr.bf16.mxu0 %v364_v39  ;;  %385 = vmatprep.subr.bf16.mxu1 %v384_v62 }
  0x42   :  { %367 = vmatpush1.bf16.msra.mxu0 %v366_v44  ;;  %387 = vmatpush3.bf16.msra.mxu1 %v384_v62 }
  0x43   :  { %369 = vmatprep.subr.bf16.mxu0 %v368_v45 }
  0x46   :  { %371 = vmatpush1.bf16.msra.mxu0 %v370_v48 }
  0x49   :  { %147 = vmatmul.mubr.f32.vlgmr.msra.gmra.mrb[0].mxu0 %v48_v49 }
  0x4a   :  { %152 = vmatprep.mubr.f32.mxu0 %v473_v0  ;;  %v186_v0 = vld [vmem:[#allocation5 + $0x48] sm:$0xff] }
  0x4b   :  { %v388_v1 = vpack.c.bf16 %v186_v0, %v185_v63 }
  0x4d   :  { %153 = vmatmul.mubr.f32.gmra.mrb[2].mxu0 %v49_v50  ;;  %389 = vmatprep.subr.bf16.mxu1 %v388_v1 }
  0x4e   :  { %391 = vmatpush3.bf16.msra.mxu1 %v388_v1 }
  0x4f   :  { %393 = vmatprep.subr.bf16.mxu1 %v392_v4 }
  0x52   :  { %395 = vmatpush3.bf16.msra.mxu1 %v392_v4 }
  0x53   :  { %397 = vmatprep.subr.bf16.mxu1 %v396_v7 }
  0x56   :  { %399 = vmatpush3.bf16.msra.mxu1 %v396_v7 }
  0x57   :  { %401 = vmatprep.subr.bf16.mxu1 %v400_v10 }
  0x5a   :  { %403 = vmatpush3.bf16.msra.mxu1 %v400_v10 }
 0x11c   :  { %v148_v11 = vpop.f32.mrb[0].mxu0 }
 0x11d   :  { %v285_v12 = vmul.f32 -1.442695, %v148_v11  ;;  %v150_v13 = vpop.f32.mrb[1].mxu0 }
 0x11f   :  { %411 = vpow2.f32 %v285_v12 }
 0x120   :  { %v154_v14 = vpop.f32.mrb[2].mxu0 }
 0x121   :  { %v286_v15 = vmul.f32 -1.442695, %v154_v14  ;;  %v156_v16 = vpop.f32.mrb[3].mxu0 }
 0x123   :  { %413 = vpow2.f32 %v286_v15 }
 0x129   :  { %v412_v17 = vpop.eup %411 }
 0x12a   :  { %v165_v18 = vadd.f32 1.0, %v412_v17 }
 0x12c   :  { %415 = vrcp.f32 %v165_v18 }
 0x12d   :  { %v414_v19 = vpop.eup %413 }
 0x12e   :  { %v166_v20 = vadd.f32 1.0, %v414_v19 }
 0x130   :  { %417 = vrcp.f32 %v166_v20 }
 0x136   :  { %v416_v21 = vpop.eup %415 }
 0x137   :  { %v171_v22 = vmul.f32 %v416_v21, %v148_v11 }
 0x139   :  { %v173_v23 = vmul.f32 %v171_v22, %v150_v13 }
 0x13a   :  { %v418_v24 = vpop.eup %417 }
 0x13b   :  { %v172_v25 = vmul.f32 %v418_v24, %v154_v14  ;;  %337 = vmatprep.mubr.f32.mxu1 %v173_v23 }
 0x13d   :  { %v174_v26 = vmul.f32 %v172_v25, %v156_v16 }
 0x13f   :  { %338 = vmatmul.mubr.f32.vlgmr.msra.gmra.mrb[0].mxu1 %v174_v26 }
 0x212   :  { %v339_v27 = vpop.f32.mrb[0].mxu1 }
 0x213   :  { %278 = vst [vmem:[%s535_s3 + $0x8] sm:$0xff] %v339_v27  ;;  %v259_v28 = vpop.f32.mrb[1].mxu1 }
 0x214   :  { %277 = vst [vmem:[%s535_s3] sm:$0xff] %v259_v28 }
 0x215   :  { %283 = vsyncpa [#allocation4], 1 }
 0x216   :  { %284 = vsyncpa [#allocation6], 1 }

</bundles_post_ra>
